<compile_context>
chip_gen: v5e
topology: v5e:2x2
jax: 0.10.0
libtpu: 0.0.40
codegen_flags: <defaults>
</compile_context>

<pallas_src>
import jax
import jax.numpy as jnp
from jax.experimental import pallas as pl
from jax.experimental.pallas import tpu as pltpu

H = 10  # hidden width

# Lane offsets of each parameter inside the packed (16, 128) tile (rows 0..9).
C_W1 = 0    # [10, 2]
C_B1 = 2    # [10, 1]
C_W2 = 3    # [10, 10]
C_B2 = 13   # [10, 1]
C_W3 = 14   # [10, 10]
C_B3 = 24   # [10, 1]
C_W4 = 25   # [10, 1]  (layer_4.weight transposed: row k holds W4[0, k])
C_B4 = 26   # [1, 1]   (row 0)
P_ROWS, P_COLS = 16, 128


def mlp_kernel(x_ref, p_ref, o_ref):
    x = x_ref[...]                                        # [2, bm]

    def col(c):                                           # [10, 1] param column
        return p_ref[0:H, c:c + 1]

    # Layer 1 (K=2): two lane-broadcast FMAs, fully off the MXU.
    h = col(C_B1) + col(C_W1) * x[0:1, :] + col(C_W1 + 1) * x[1:2, :]
    h = jnp.maximum(h, 0.0)                               # [10, bm]

    # Layers 2-3 (10x10): all-VPU broadcast-FMA (out = sum_k W[:,k] * h[k,:]).
    def dense_relu(h, c_w, c_b):
        acc = col(c_b) + col(c_w) * h[0:1, :]
        for k in range(1, H):
            acc = acc + col(c_w + k) * h[k:k + 1, :]
        return jnp.maximum(acc, 0.0)

    h = dense_relu(h, C_W2, C_B2)
    h = dense_relu(h, C_W3, C_B3)

    # Layer 4 (10 -> 1): weight column * h, then a cross-sublane reduce (XLU).
    out = jnp.sum(col(C_W4) * h, axis=0, keepdims=True) + p_ref[0:1, C_B4:C_B4 + 1]

    o_ref[...] = out.astype(o_ref.dtype)                  # [1, bm] lane-dense store


def pack_params(params):
    """Pack (W1,b1)..(W4,b4) into one (16,128) f32 tile (one VMEM tile)."""
    (w1, b1), (w2, b2), (w3, b3), (w4, b4) = params
    p = jnp.zeros((P_ROWS, P_COLS), jnp.float32)
    p = p.at[0:H, C_W1:C_W1 + 2].set(w1.astype(jnp.float32))
    p = p.at[0:H, C_B1:C_B1 + 1].set(b1.reshape(H, 1).astype(jnp.float32))
    p = p.at[0:H, C_W2:C_W2 + H].set(w2.astype(jnp.float32))
    p = p.at[0:H, C_B2:C_B2 + 1].set(b2.reshape(H, 1).astype(jnp.float32))
    p = p.at[0:H, C_W3:C_W3 + H].set(w3.astype(jnp.float32))
    p = p.at[0:H, C_B3:C_B3 + 1].set(b3.reshape(H, 1).astype(jnp.float32))
    p = p.at[0:H, C_W4:C_W4 + 1].set(w4.reshape(H, 1).astype(jnp.float32))
    p = p.at[0:1, C_B4:C_B4 + 1].set(b4.reshape(1, 1).astype(jnp.float32))
    return p


def _round_up(n, m):
    return ((n + m - 1) // m) * m


_SINGLE_TC_KINDS = ("v5 lite", "v5e", "v5litepod", "v6 lite", "v6e")


def _default_target_steps():
    """>=4 grid steps (2 per TensorCore) on 2-TC chips (v7x); fewest steps on
    single-TC chips (v5e/v6e) where the grid is a pure serial loop."""
    try:
        kind = jax.devices()[0].device_kind.lower()
        if any(t in kind for t in _SINGLE_TC_KINDS):
            return 1
    except Exception:
        pass
    return 4


def _choose_bm(batch, target_steps, cap):
    b128 = _round_up(batch, 128)
    bm = max(128, (b128 // max(1, target_steps)) // 128 * 128)
    return min(bm, b128, cap)


def circle_model_v3(x, params, *, target_grid_steps=None, bm_cap=1024):
    """x: [B, 2] float32 -> [B, 1] float32 (matches the PyTorch forward)."""
    B, F = x.shape
    assert F == 2
    if target_grid_steps is None:
        target_grid_steps = _default_target_steps()
    bm = _choose_bm(B, target_grid_steps, bm_cap)
    grid = -(-B // bm)                 # cdiv
    b_pad = grid * bm

    # Batch -> lane axis.  Plumbing is a single transpose; pad only if needed.
    xt = x.T                           # [2, B]
    if b_pad != B:
        xt = jnp.pad(xt, ((0, 0), (0, b_pad - B)))

    p = pack_params(params)

    out_t = pl.pallas_call(
        mlp_kernel,
        out_shape=jax.ShapeDtypeStruct((1, b_pad), jnp.float32),
        grid_spec=pltpu.PrefetchScalarGridSpec(
            num_scalar_prefetch=0,
            grid=(grid,),
            in_specs=[
                pl.BlockSpec((2, bm), lambda i: (0, i)),            # batch tile
                pl.BlockSpec((P_ROWS, P_COLS), lambda i: (0, 0)),   # packed params
            ],
            out_specs=pl.BlockSpec((1, bm), lambda i: (0, i)),
        ),
        compiler_params=pltpu.CompilerParams(
            dimension_semantics=("parallel",)),
    )(xt, p)

    return out_t[:, :B].T              # [B, 1]


def init_params(key):
    """Deterministic init mirroring nn.Linear (W: [out, in], b: [out, 1],
    uniform +/- 1/sqrt(fan_in))."""
    dims = [(2, 10), (10, 10), (10, 10), (10, 1)]
    params = []
    for fan_in, fan_out in dims:
        key, kw, kb = jax.random.split(key, 3)
        bound = 1.0 / jnp.sqrt(fan_in)
        w = jax.random.uniform(kw, (fan_out, fan_in), jnp.float32, -bound, bound)
        b = jax.random.uniform(kb, (fan_out, 1), jnp.float32, -bound, bound)
        params.append((w, b))
    return params


def reference(x, params):
    h = x
    for i, (w, b) in enumerate(params):
        h = jnp.dot(h, w.T, precision=jax.lax.Precision.HIGHEST) + b.T
        if i < len(params) - 1:
            h = jnp.maximum(h, 0.0)
    return h


if __name__ == "__main__":
    key = jax.random.PRNGKey(0)
    kx, kp = jax.random.split(key)
    B = 1024                     # small, but gives a multi-step grid on v7x
    x = jax.random.normal(kx, (B, 2), jnp.float32)
    params = init_params(kp)

    out = jax.block_until_ready(circle_model_v3(x, params))

    ref = reference(x, params)
    assert out.shape == (B, 1)
    assert jnp.allclose(out, ref, atol=1e-5, rtol=1e-5)
    print("KERNEL_OK")
</pallas_src>

<mosaic_0001>
module attributes {stable_mosaic.version = 11 : i64} {
  func.func @mlp_kernel(%arg0: i32, %arg1: memref<2x256xf32, #tpu.memory_space<vmem>>, %arg2: memref<16x128xf32, #tpu.memory_space<vmem>>, %arg3: memref<1x256xf32, #tpu.memory_space<vmem>>) attributes {dimension_semantics = [#tpu.dimension_semantics<parallel>], iteration_bounds = array<i64: 4>, scalar_prefetch = 0 : i64, scratch_operands = 0 : i64, tpu.core_type = #tpu.core_type<tc>, window_params = [{transform_indices = @transform_0, window_bounds = array<i64: 2, 256>}, {pipeline_mode = #tpu.pipeline_mode<synchronous>, transform_indices = @transform_1, window_bounds = array<i64: 16, 128>}, {transform_indices = @transform_2, window_bounds = array<i64: 1, 256>}]} {
    %c0 = arith.constant 0 : index
    %c0_0 = arith.constant 0 : index
    %0 = vector.load %arg1[%c0, %c0_0] : memref<2x256xf32, #tpu.memory_space<vmem>>, vector<2x256xf32>
    %c0_1 = arith.constant 0 : index
    %c2 = arith.constant 2 : index
    %1 = vector.load %arg2[%c0_1, %c2] : memref<16x128xf32, #tpu.memory_space<vmem>>, vector<10x1xf32>
    %c0_2 = arith.constant 0 : index
    %c0_3 = arith.constant 0 : index
    %2 = vector.load %arg2[%c0_2, %c0_3] : memref<16x128xf32, #tpu.memory_space<vmem>>, vector<10x1xf32>
    %3 = vector.extract_strided_slice %0 {offsets = [0, 0], sizes = [1, 256], strides = [1, 1]} : vector<2x256xf32> to vector<1x256xf32>
    %4 = vector.broadcast %2 : vector<10x1xf32> to vector<10x256xf32>
    %5 = vector.broadcast %3 : vector<1x256xf32> to vector<10x256xf32>
    %6 = arith.mulf %4, %5 : vector<10x256xf32>
    %7 = vector.broadcast %1 : vector<10x1xf32> to vector<10x256xf32>
    %8 = arith.addf %7, %6 : vector<10x256xf32>
    %c0_4 = arith.constant 0 : index
    %c1 = arith.constant 1 : index
    %9 = vector.load %arg2[%c0_4, %c1] : memref<16x128xf32, #tpu.memory_space<vmem>>, vector<10x1xf32>
    %10 = vector.extract_strided_slice %0 {offsets = [1, 0], sizes = [1, 256], strides = [1, 1]} : vector<2x256xf32> to vector<1x256xf32>
    %11 = vector.broadcast %9 : vector<10x1xf32> to vector<10x256xf32>
    %12 = vector.broadcast %10 : vector<1x256xf32> to vector<10x256xf32>
    %13 = arith.mulf %11, %12 : vector<10x256xf32>
    %14 = arith.addf %8, %13 : vector<10x256xf32>
    %cst = arith.constant 0.000000e+00 : f32
    %15 = vector.broadcast %cst : f32 to vector<10x256xf32>
    %16 = arith.maximumf %14, %15 : vector<10x256xf32>
    %c0_5 = arith.constant 0 : index
    %c13 = arith.constant 13 : index
    %17 = vector.load %arg2[%c0_5, %c13] : memref<16x128xf32, #tpu.memory_space<vmem>>, vector<10x1xf32>
    %c0_6 = arith.constant 0 : index
    %c3 = arith.constant 3 : index
    %18 = vector.load %arg2[%c0_6, %c3] : memref<16x128xf32, #tpu.memory_space<vmem>>, vector<10x1xf32>
    %19 = vector.extract_strided_slice %16 {offsets = [0, 0], sizes = [1, 256], strides = [1, 1]} : vector<10x256xf32> to vector<1x256xf32>
    %20 = vector.broadcast %18 : vector<10x1xf32> to vector<10x256xf32>
    %21 = vector.broadcast %19 : vector<1x256xf32> to vector<10x256xf32>
    %22 = arith.mulf %20, %21 : vector<10x256xf32>
    %23 = vector.broadcast %17 : vector<10x1xf32> to vector<10x256xf32>
    %24 = arith.addf %23, %22 : vector<10x256xf32>
    %c0_7 = arith.constant 0 : index
    %c4 = arith.constant 4 : index
    %25 = vector.load %arg2[%c0_7, %c4] : memref<16x128xf32, #tpu.memory_space<vmem>>, vector<10x1xf32>
    %26 = vector.extract_strided_slice %16 {offsets = [1, 0], sizes = [1, 256], strides = [1, 1]} : vector<10x256xf32> to vector<1x256xf32>
    %27 = vector.broadcast %25 : vector<10x1xf32> to vector<10x256xf32>
    %28 = vector.broadcast %26 : vector<1x256xf32> to vector<10x256xf32>
    %29 = arith.mulf %27, %28 : vector<10x256xf32>
    %30 = arith.addf %24, %29 : vector<10x256xf32>
    %c0_8 = arith.constant 0 : index
    %c5 = arith.constant 5 : index
    %31 = vector.load %arg2[%c0_8, %c5] : memref<16x128xf32, #tpu.memory_space<vmem>>, vector<10x1xf32>
    %32 = vector.extract_strided_slice %16 {offsets = [2, 0], sizes = [1, 256], strides = [1, 1]} : vector<10x256xf32> to vector<1x256xf32>
    %33 = vector.broadcast %31 : vector<10x1xf32> to vector<10x256xf32>
    %34 = vector.broadcast %32 : vector<1x256xf32> to vector<10x256xf32>
    %35 = arith.mulf %33, %34 : vector<10x256xf32>
    %36 = arith.addf %30, %35 : vector<10x256xf32>
    %c0_9 = arith.constant 0 : index
    %c6 = arith.constant 6 : index
    %37 = vector.load %arg2[%c0_9, %c6] : memref<16x128xf32, #tpu.memory_space<vmem>>, vector<10x1xf32>
    %38 = vector.extract_strided_slice %16 {offsets = [3, 0], sizes = [1, 256], strides = [1, 1]} : vector<10x256xf32> to vector<1x256xf32>
    %39 = vector.broadcast %37 : vector<10x1xf32> to vector<10x256xf32>
    %40 = vector.broadcast %38 : vector<1x256xf32> to vector<10x256xf32>
    %41 = arith.mulf %39, %40 : vector<10x256xf32>
    %42 = arith.addf %36, %41 : vector<10x256xf32>
    %c0_10 = arith.constant 0 : index
    %c7 = arith.constant 7 : index
    %43 = vector.load %arg2[%c0_10, %c7] : memref<16x128xf32, #tpu.memory_space<vmem>>, vector<10x1xf32>
    %44 = vector.extract_strided_slice %16 {offsets = [4, 0], sizes = [1, 256], strides = [1, 1]} : vector<10x256xf32> to vector<1x256xf32>
    %45 = vector.broadcast %43 : vector<10x1xf32> to vector<10x256xf32>
    %46 = vector.broadcast %44 : vector<1x256xf32> to vector<10x256xf32>
    %47 = arith.mulf %45, %46 : vector<10x256xf32>
    %48 = arith.addf %42, %47 : vector<10x256xf32>
    %c0_11 = arith.constant 0 : index
    %c8 = arith.constant 8 : index
    %49 = vector.load %arg2[%c0_11, %c8] : memref<16x128xf32, #tpu.memory_space<vmem>>, vector<10x1xf32>
    %50 = vector.extract_strided_slice %16 {offsets = [5, 0], sizes = [1, 256], strides = [1, 1]} : vector<10x256xf32> to vector<1x256xf32>
    %51 = vector.broadcast %49 : vector<10x1xf32> to vector<10x256xf32>
    %52 = vector.broadcast %50 : vector<1x256xf32> to vector<10x256xf32>
    %53 = arith.mulf %51, %52 : vector<10x256xf32>
    %54 = arith.addf %48, %53 : vector<10x256xf32>
    %c0_12 = arith.constant 0 : index
    %c9 = arith.constant 9 : index
    %55 = vector.load %arg2[%c0_12, %c9] : memref<16x128xf32, #tpu.memory_space<vmem>>, vector<10x1xf32>
    %56 = vector.extract_strided_slice %16 {offsets = [6, 0], sizes = [1, 256], strides = [1, 1]} : vector<10x256xf32> to vector<1x256xf32>
    %57 = vector.broadcast %55 : vector<10x1xf32> to vector<10x256xf32>
    %58 = vector.broadcast %56 : vector<1x256xf32> to vector<10x256xf32>
    %59 = arith.mulf %57, %58 : vector<10x256xf32>
    %60 = arith.addf %54, %59 : vector<10x256xf32>
    %c0_13 = arith.constant 0 : index
    %c10 = arith.constant 10 : index
    %61 = vector.load %arg2[%c0_13, %c10] : memref<16x128xf32, #tpu.memory_space<vmem>>, vector<10x1xf32>
    %62 = vector.extract_strided_slice %16 {offsets = [7, 0], sizes = [1, 256], strides = [1, 1]} : vector<10x256xf32> to vector<1x256xf32>
    %63 = vector.broadcast %61 : vector<10x1xf32> to vector<10x256xf32>
    %64 = vector.broadcast %62 : vector<1x256xf32> to vector<10x256xf32>
    %65 = arith.mulf %63, %64 : vector<10x256xf32>
    %66 = arith.addf %60, %65 : vector<10x256xf32>
    %c0_14 = arith.constant 0 : index
    %c11 = arith.constant 11 : index
    %67 = vector.load %arg2[%c0_14, %c11] : memref<16x128xf32, #tpu.memory_space<vmem>>, vector<10x1xf32>
    %68 = vector.extract_strided_slice %16 {offsets = [8, 0], sizes = [1, 256], strides = [1, 1]} : vector<10x256xf32> to vector<1x256xf32>
    %69 = vector.broadcast %67 : vector<10x1xf32> to vector<10x256xf32>
    %70 = vector.broadcast %68 : vector<1x256xf32> to vector<10x256xf32>
    %71 = arith.mulf %69, %70 : vector<10x256xf32>
    %72 = arith.addf %66, %71 : vector<10x256xf32>
    %c0_15 = arith.constant 0 : index
    %c12 = arith.constant 12 : index
    %73 = vector.load %arg2[%c0_15, %c12] : memref<16x128xf32, #tpu.memory_space<vmem>>, vector<10x1xf32>
    %74 = vector.extract_strided_slice %16 {offsets = [9, 0], sizes = [1, 256], strides = [1, 1]} : vector<10x256xf32> to vector<1x256xf32>
    %75 = vector.broadcast %73 : vector<10x1xf32> to vector<10x256xf32>
    %76 = vector.broadcast %74 : vector<1x256xf32> to vector<10x256xf32>
    %77 = arith.mulf %75, %76 : vector<10x256xf32>
    %78 = arith.addf %72, %77 : vector<10x256xf32>
    %cst_16 = arith.constant 0.000000e+00 : f32
    %79 = vector.broadcast %cst_16 : f32 to vector<10x256xf32>
    %80 = arith.maximumf %78, %79 : vector<10x256xf32>
    %c0_17 = arith.constant 0 : index
    %c24 = arith.constant 24 : index
    %81 = vector.load %arg2[%c0_17, %c24] : memref<16x128xf32, #tpu.memory_space<vmem>>, vector<10x1xf32>
    %c0_18 = arith.constant 0 : index
    %c14 = arith.constant 14 : index
    %82 = vector.load %arg2[%c0_18, %c14] : memref<16x128xf32, #tpu.memory_space<vmem>>, vector<10x1xf32>
    %83 = vector.extract_strided_slice %80 {offsets = [0, 0], sizes = [1, 256], strides = [1, 1]} : vector<10x256xf32> to vector<1x256xf32>
    %84 = vector.broadcast %82 : vector<10x1xf32> to vector<10x256xf32>
    %85 = vector.broadcast %83 : vector<1x256xf32> to vector<10x256xf32>
    %86 = arith.mulf %84, %85 : vector<10x256xf32>
    %87 = vector.broadcast %81 : vector<10x1xf32> to vector<10x256xf32>
    %88 = arith.addf %87, %86 : vector<10x256xf32>
    %c0_19 = arith.constant 0 : index
    %c15 = arith.constant 15 : index
    %89 = vector.load %arg2[%c0_19, %c15] : memref<16x128xf32, #tpu.memory_space<vmem>>, vector<10x1xf32>
    %90 = vector.extract_strided_slice %80 {offsets = [1, 0], sizes = [1, 256], strides = [1, 1]} : vector<10x256xf32> to vector<1x256xf32>
    %91 = vector.broadcast %89 : vector<10x1xf32> to vector<10x256xf32>
    %92 = vector.broadcast %90 : vector<1x256xf32> to vector<10x256xf32>
    %93 = arith.mulf %91, %92 : vector<10x256xf32>
    %94 = arith.addf %88, %93 : vector<10x256xf32>
    %c0_20 = arith.constant 0 : index
    %c16 = arith.constant 16 : index
    %95 = vector.load %arg2[%c0_20, %c16] : memref<16x128xf32, #tpu.memory_space<vmem>>, vector<10x1xf32>
    %96 = vector.extract_strided_slice %80 {offsets = [2, 0], sizes = [1, 256], strides = [1, 1]} : vector<10x256xf32> to vector<1x256xf32>
    %97 = vector.broadcast %95 : vector<10x1xf32> to vector<10x256xf32>
    %98 = vector.broadcast %96 : vector<1x256xf32> to vector<10x256xf32>
    %99 = arith.mulf %97, %98 : vector<10x256xf32>
    %100 = arith.addf %94, %99 : vector<10x256xf32>
    %c0_21 = arith.constant 0 : index
    %c17 = arith.constant 17 : index
    %101 = vector.load %arg2[%c0_21, %c17] : memref<16x128xf32, #tpu.memory_space<vmem>>, vector<10x1xf32>
    %102 = vector.extract_strided_slice %80 {offsets = [3, 0], sizes = [1, 256], strides = [1, 1]} : vector<10x256xf32> to vector<1x256xf32>
    %103 = vector.broadcast %101 : vector<10x1xf32> to vector<10x256xf32>
    %104 = vector.broadcast %102 : vector<1x256xf32> to vector<10x256xf32>
    %105 = arith.mulf %103, %104 : vector<10x256xf32>
    %106 = arith.addf %100, %105 : vector<10x256xf32>
    %c0_22 = arith.constant 0 : index
    %c18 = arith.constant 18 : index
    %107 = vector.load %arg2[%c0_22, %c18] : memref<16x128xf32, #tpu.memory_space<vmem>>, vector<10x1xf32>
    %108 = vector.extract_strided_slice %80 {offsets = [4, 0], sizes = [1, 256], strides = [1, 1]} : vector<10x256xf32> to vector<1x256xf32>
    %109 = vector.broadcast %107 : vector<10x1xf32> to vector<10x256xf32>
    %110 = vector.broadcast %108 : vector<1x256xf32> to vector<10x256xf32>
    %111 = arith.mulf %109, %110 : vector<10x256xf32>
    %112 = arith.addf %106, %111 : vector<10x256xf32>
    %c0_23 = arith.constant 0 : index
    %c19 = arith.constant 19 : index
    %113 = vector.load %arg2[%c0_23, %c19] : memref<16x128xf32, #tpu.memory_space<vmem>>, vector<10x1xf32>
    %114 = vector.extract_strided_slice %80 {offsets = [5, 0], sizes = [1, 256], strides = [1, 1]} : vector<10x256xf32> to vector<1x256xf32>
    %115 = vector.broadcast %113 : vector<10x1xf32> to vector<10x256xf32>
    %116 = vector.broadcast %114 : vector<1x256xf32> to vector<10x256xf32>
    %117 = arith.mulf %115, %116 : vector<10x256xf32>
    %118 = arith.addf %112, %117 : vector<10x256xf32>
    %c0_24 = arith.constant 0 : index
    %c20 = arith.constant 20 : index
    %119 = vector.load %arg2[%c0_24, %c20] : memref<16x128xf32, #tpu.memory_space<vmem>>, vector<10x1xf32>
    %120 = vector.extract_strided_slice %80 {offsets = [6, 0], sizes = [1, 256], strides = [1, 1]} : vector<10x256xf32> to vector<1x256xf32>
    %121 = vector.broadcast %119 : vector<10x1xf32> to vector<10x256xf32>
    %122 = vector.broadcast %120 : vector<1x256xf32> to vector<10x256xf32>
    %123 = arith.mulf %121, %122 : vector<10x256xf32>
    %124 = arith.addf %118, %123 : vector<10x256xf32>
    %c0_25 = arith.constant 0 : index
    %c21 = arith.constant 21 : index
    %125 = vector.load %arg2[%c0_25, %c21] : memref<16x128xf32, #tpu.memory_space<vmem>>, vector<10x1xf32>
    %126 = vector.extract_strided_slice %80 {offsets = [7, 0], sizes = [1, 256], strides = [1, 1]} : vector<10x256xf32> to vector<1x256xf32>
    %127 = vector.broadcast %125 : vector<10x1xf32> to vector<10x256xf32>
    %128 = vector.broadcast %126 : vector<1x256xf32> to vector<10x256xf32>
    %129 = arith.mulf %127, %128 : vector<10x256xf32>
    %130 = arith.addf %124, %129 : vector<10x256xf32>
    %c0_26 = arith.constant 0 : index
    %c22 = arith.constant 22 : index
    %131 = vector.load %arg2[%c0_26, %c22] : memref<16x128xf32, #tpu.memory_space<vmem>>, vector<10x1xf32>
    %132 = vector.extract_strided_slice %80 {offsets = [8, 0], sizes = [1, 256], strides = [1, 1]} : vector<10x256xf32> to vector<1x256xf32>
    %133 = vector.broadcast %131 : vector<10x1xf32> to vector<10x256xf32>
    %134 = vector.broadcast %132 : vector<1x256xf32> to vector<10x256xf32>
    %135 = arith.mulf %133, %134 : vector<10x256xf32>
    %136 = arith.addf %130, %135 : vector<10x256xf32>
    %c0_27 = arith.constant 0 : index
    %c23 = arith.constant 23 : index
    %137 = vector.load %arg2[%c0_27, %c23] : memref<16x128xf32, #tpu.memory_space<vmem>>, vector<10x1xf32>
    %138 = vector.extract_strided_slice %80 {offsets = [9, 0], sizes = [1, 256], strides = [1, 1]} : vector<10x256xf32> to vector<1x256xf32>
    %139 = vector.broadcast %137 : vector<10x1xf32> to vector<10x256xf32>
    %140 = vector.broadcast %138 : vector<1x256xf32> to vector<10x256xf32>
    %141 = arith.mulf %139, %140 : vector<10x256xf32>
    %142 = arith.addf %136, %141 : vector<10x256xf32>
    %cst_28 = arith.constant 0.000000e+00 : f32
    %143 = vector.broadcast %cst_28 : f32 to vector<10x256xf32>
    %144 = arith.maximumf %142, %143 : vector<10x256xf32>
    %c0_29 = arith.constant 0 : index
    %c25 = arith.constant 25 : index
    %145 = vector.load %arg2[%c0_29, %c25] : memref<16x128xf32, #tpu.memory_space<vmem>>, vector<10x1xf32>
    %146 = vector.broadcast %145 : vector<10x1xf32> to vector<10x256xf32>
    %147 = arith.mulf %146, %144 : vector<10x256xf32>
    %cst_30 = arith.constant dense<0.000000e+00> : vector<256xf32>
    %148 = vector.multi_reduction <add>, %147, %cst_30 [0] : vector<10x256xf32> to vector<256xf32>
    %149 = vector.shape_cast %148 : vector<256xf32> to vector<1x256xf32>
    %c0_31 = arith.constant 0 : index
    %c26 = arith.constant 26 : index
    %150 = vector.load %arg2[%c0_31, %c26] : memref<16x128xf32, #tpu.memory_space<vmem>>, vector<1x1xf32>
    %151 = vector.broadcast %150 : vector<1x1xf32> to vector<1x256xf32>
    %152 = arith.addf %149, %151 : vector<1x256xf32>
    %c0_32 = arith.constant 0 : index
    %c0_33 = arith.constant 0 : index
    %153 = vector.load %arg3[%c0_32, %c0_33] : memref<1x256xf32, #tpu.memory_space<vmem>>, vector<1x256xf32>
    tpu.vector_store %arg3[%c0_32, %c0_33], %152 {strides = array<i32>} : memref<1x256xf32, #tpu.memory_space<vmem>>, vector<1x256xf32>,
    return
  }
  func.func @transform_0(%arg0: i32) -> (i32, i32) {
    %c0_i32 = arith.constant 0 : i32
    %c0_i32_0 = arith.constant 0 : i32
    return %c0_i32, %arg0 : i32, i32
  }
  func.func @transform_1(%arg0: i32) -> (i32, i32) {
    %c0_i32 = arith.constant 0 : i32
    %c0_i32_0 = arith.constant 0 : i32
    %c0_i32_1 = arith.constant 0 : i32
    return %c0_i32, %c0_i32_0 : i32, i32
  }
  func.func @transform_2(%arg0: i32) -> (i32, i32) {
    %c0_i32 = arith.constant 0 : i32
    %c0_i32_0 = arith.constant 0 : i32
    return %c0_i32, %arg0 : i32, i32
  }
}

</mosaic_0001>

<bundles_post_ra>
// kernel: tpu_custom_call.1
= control target key start
LH: loop header
LB: loop body
LE: loop exit
PB: predicated region body
PF: predicated region fallthrough
CT: control target
= control target key end

     0   :  { %7 = vsyncpa [#allocation3], 0  ;;  %s1387_s0 = inlined_call_operand.hbm [shape: f32[2,1024], index: 0, kind: input, shape index: {}]   ;;  %s1388_s1 = inlined_call_operand.hbm [shape: f32[16,128], index: 1, kind: input, shape index: {}]   ;;  %s1389_s2 = inlined_call_operand.hbm [shape: f32[1,1024], index: 2, kind: output, shape index: {}]  }
   0x1   :  { %9 = vsyncpa [#allocation3 + $0x1], 0 }
   0x2   :  { %10 = vsyncpa [#allocation6], 0 }
   0x3   :  { %11 = vsyncpa [#allocation4], 0 }
   0x4   :  { %13 = vsyncpa [#allocation4 + $0x1], 0  ;;  %s1101_s9 = smov 0   ;;  %s1103_s10 = smov 0  }
   0x5   :  { %s1105_s11 = smov 0   ;;  %s1107_s12 = smov 0  }
   0x6 LB: > { %s108_s15 = sshll.u32 %s1388_s1, 4  ;;  %s1125_s16 = sadd.s32 4294967295, %s1054_s12   ;;  %s1054_s12 = sphi %s1107_s12, %s1398_s12   ;;  %s1050_s11 = sphi %s1105_s11, %s1397_s11   ;;  %s1046_s10 = sphi %s1103_s10, %s1396_s10   ;;  %s1042_s9 = sphi %s1101_s9, %s1395_s9   ;;  %s109_s15 = int_to_ptr.hbm [resolvable:$true] %s108_s15 }
   0x7   : > { %p772_p0 = scmp.ge.s32.totalorder %s1054_s12, 1  ;;  %p40_p1 = scmp.eq.s32.totalorder %s1125_s16, 0 }
   0x8   : > { %p97_p2 = scmp.lt.s32.totalorder %s1054_s12, 5  ;;  %s1056_s18 = smov [#allocation5]  }
   0x9   : > { %s110_s19 = sshll.u32 %s1056_s18, 4  ;;  %s1057_s20 = smov 128   ;;  %s111_s19 = int_to_ptr.vmem [resolvable:$true] %s110_s19 }
   0xa   : > { %p1130_p3 = pnand %p772_p0, %p97_p2  ;;  %s1058_s21 = smov 8  }
   0xb   : > { %s771_s22 = sadd.s32 4294967294, %s1054_s12   ;;  %s1140_s23 = sadd.s32 1, %s1054_s12  }
   0xc   : > { %p795_p4 = pneg %p1130_p3  ;;  %s26_s24 = sadd.s32 1, %s1050_s11 }
   0xd   : > { %s23_s25 = ssub.s32 %s1054_s12, %s1140_s23  ;;  %p33_p6 = scmp.ne.s32.totalorder %s1050_s11, %s1046_s10 }
   0xe   : > { %p796_p5 = pnand %p795_p4, %p40_p1  ;;  %p24_p7 = scmp.eq.s32.totalorder %s23_s25, 0 }
   0xf   : > { %p34_p8 = scmp.eq.s32.totalorder %s1054_s12, 0  ;;  %p39_p9 = scmp.ne.s32.totalorder %s1046_s10, %s1042_s9 }
  0x10   : > { %798 = dma.hbm_to_vmem [thread:$0]  (!%p796_p5), %s109_s15, 256, %s111_s19, [#allocation6], %s1057_s20, %s1057_s20, %s1058_s21  }
  0x11   : > { %p84_p10 = scmp.eq.s32.totalorder %s1125_s16, 3  ;;  %p1156_p11 = por %p40_p1, %p39_p9 }
  0x12   : > { %s1152_s26 = scalar_select %p24_p7, %s1050_s11, %s26_s24  }
  0x13   : > { %p1160_p12 = por %p84_p10, %p33_p6  ;;  %p90_p13 = scmp.eq.s32.totalorder %s771_s22, 3 }
  0x14   : > { %p35_p0 = por %p34_p8, %p33_p6  ;;  %s124_s29 = sand.u32 1, %s1050_s11  }
  0x15   : > { %p1165_p2 = por %p90_p13, %p39_p9  ;;  %p808_p4 = scmp.lt.s32.totalorder %s1054_s12, 4 }
  0x16   : > { %s775_s3 = sshll.u32 %s124_s29, 2  ;;  %s786_s4 = sshll.u32 %s1054_s12, 2 }
  0x17   : > { %s133_s7 = scalar_lea.hbm %s1387_s0, %s786_s4  ;;  %s128_s13 = scalar_lea.vmem [#allocation2], %s775_s3 }
  0x18   : > { %s135_s8 = sshll.u32 %s133_s7, 4  ;;  %s137_s14 = sshll.u32 %s128_s13, 4  ;;  %s136_s8 = int_to_ptr.hbm [resolvable:$true] %s135_s8  ;;  %s138_s14 = int_to_ptr.vmem [resolvable:$true] %s137_s14 }
  0x19   : > { %p1174_p5 = pnand %p808_p4, %p35_p0  ;;  %s125_s18 = scalar_lea.sflag [#allocation3], %s124_s29 }
  0x1a   : > { %s954_s19 = sshra.s32 %s136_s8, 4  ;;  %s961_s24 = scalar_lea.hbm %s1387_s0, 16  ;;  %s955_s19 = int_to_ptr.hbm [resolvable:$true] %s954_s19 }
  0x1b   : > { %s956_s20 = scalar_lea.hbm %s955_s19, 4  ;;  %p958_p7 = pneg %p1174_p5 }
  0x1c   : > { %p957_p6 = scmp.ne.s32.totalorder %s955_s19, %s956_s20  ;;  %p962_p10 = scmp.lt.s32.totalorder %s955_s19, %s1387_s0 }
  0x1d   : > { %p963_p13 = scmp.lt.s32.totalorder %s961_s24, %s956_s20 }
  0x1e   : > { %p959_p8 = pnand %p958_p7, %p957_p6 }
  0x1f   : > { %p964_p0 = por %p963_p13, %p962_p10 }
  0x20   : > { %p960_p9 = pneg %p959_p8 }
  0x22   : > { %p965_p4 = pnand %p964_p0, %p960_p9 }
  0x24   : > { %968 = shalt.err (!%p965_p4)
}
  0x25   : > { %802 = dma.hbm_to_vmem [thread:$0]  (!%p1174_p5), %s136_s8, 64, %s138_s14, %s125_s18  }
  0x26   : > { %146 = sbr.rel (%p1130_p3) target bundleno = 367 (0x16f), region = 28  ;;  %s1191_s29 = sand.u32 (!%p1130_p3), 1, %s1046_s10  }
  0x27   : > { %s779_s4 = sshll.u32 (!%p1130_p3), %s1191_s29, 2  ;;  %s149_s5 = scalar_lea.sflag (!%p1130_p3), [#allocation3], %s1191_s29 }
  0x28   : > { %s1195_s6 = scalar_lea.vmem (!%p1130_p3), [#allocation2], %s779_s4 }
  0x2b   : > { %1029 = dma.done.wait (%p1156_p11), %s149_s5, 64  }
  0x2c   : > { %1031 = vsyncadd (%p1156_p11), %s149_s5, 4294967232 }
  0x2d   : > { %1033 = dma.done.wait (%p40_p1), [#allocation6], 256  }
  0x2e   : > { %1035 = vsyncadd (%p40_p1), [#allocation6], 4294967040  ;;  %v1059_v0 = vmov 1   ;;  %v1060_v1 = vmov 2   ;;  %v1061_v2 = vmov 0   ;;  %v1205_v3 = vld [vmem:[#allocation5] sm:$0xff] }
  0x2f   : > { %875 = vset.pattern.permute.xlu2 %v1059_v0  ;;  %874 = vset.pattern.permute.xlu1 %v1060_v1  ;;  %v1210_v4 = vld [vmem:[#allocation5 + $0x8] sm:$0x3]  ;;  %v1062_v5 = vmov 13   ;;  %v1063_v6 = vmov 3   ;;  %v1064_v7 = vmov 4   ;;  %v1065_v8 = vmov 5  }
  0x30   : > { %873 = vset.pattern.permute.xlu0 %v1061_v2  ;;  %218 = vperm.xlu2 %875, %v1205_v3   ;;  %v1066_v9 = vmov 7   ;;  %v1067_v10 = vmov 6   ;;  %v1068_v11 = vmov 9   ;;  %v1069_v12 = vmov 8   ;;  %v181_v23 = vld [vmem:[%s1195_s6] sm:$0xf] }
  0x31   : > { %206 = vperm.xlu1 %874, %v1205_v3   ;;  %186 = vperm.xlu0 %873, %v1205_v3   ;;  %v1070_v13 = vmov 12   ;;  %v1071_v14 = vmov 24   ;;  %v1072_v15 = vmov 10   ;;  %v1073_v16 = vmov 17   ;;  %s781_s17 = sshll.u32 %s1191_s29, 1  ;;  %s783_s27 = sshll.u32 %s1125_s16, 1 }
  0x32   : > { %v1074_v17 = vmov 11   ;;  %v1075_v18 = vmov 19   ;;  %v1076_v19 = vmov 14   ;;  %v1077_v21 = vmov 22   ;;  %s686_s13 = scalar_lea.hbm %s1389_s2, %s783_s27  ;;  %s178_s14 = scalar_lea.vmem [#allocation7], %s781_s17 }
  0x33   : > { %v225_v25 = vperm.slane %v181_v23, 1  ;;  %v226_v26 = vperm.slane %v181_v23, 3  ;;  %v1078_v27 = vmov 15   ;;  %v195_v28 = vperm.slane %v181_v23, 0  ;;  %s688_s15 = sshll.u32 %s178_s14, 4  ;;  %s690_s18 = sshll.u32 %s686_s13, 4  ;;  %s689_s15 = int_to_ptr.vmem [resolvable:$true] %s688_s15  ;;  %s691_s18 = int_to_ptr.hbm [resolvable:$true] %s690_s18 }
  0x34   : > { %v196_v29 = vperm.slane %v181_v23, 2  ;;  %v1079_v40 = vmov 16   ;;  %v1080_v62 = vmov 18   ;;  %vm639_vm0 = vcmask 1041408   ;;  %s676_s16 = scalar_lea.sflag [#allocation4], %s1191_s29  ;;  %s998_s19 = sshra.s32 %s691_s18, 4  ;;  %s999_s19 = int_to_ptr.hbm [resolvable:$true] %s998_s19 }
  0x35   : > { %v229_v30 = vperm.slane %v225_v25, 1  ;;  %v230_v31 = vperm.slane %v226_v26, 1  ;;  %v199_v32 = vperm.slane %v195_v28, 0  ;;  %vm667_vm1 = vcmask 1040384   ;;  %s1000_s20 = scalar_lea.hbm %s999_s19, 2  ;;  %s1004_s24 = scalar_lea.hbm %s1389_s2, 8 }
  0x36   : > { %v200_v33 = vperm.slane %v196_v29, 0  ;;  %v1081_v29 = vmov 25   ;;  %p1001_p1 = scmp.ne.s32.totalorder %s999_s19, %s1000_s20  ;;  %p1005_p5 = scmp.lt.s32.totalorder %s999_s19, %s1389_s2 }
  0x37   : > { %p1006_p6 = scmp.lt.s32.totalorder %s1004_s24, %s1000_s20 }
  0x38   : > { %222 = vperm.xlu2 %875, %v1210_v4   ;;  %p1002_p3 = pnand %p1001_p1, %p1160_p12 }
  0x39   : > { %210 = vperm.xlu1 %874, %v1210_v4   ;;  %191 = vperm.xlu0 %873, %v1210_v4   ;;  %p1007_p7 = por %p1006_p6, %p1005_p5 }
  0x3a   : > { %p1003_p11 = pneg %p1002_p3 }
  0x3c   : > { %p1008_p8 = pnand %p1007_p7, %p1003_p11 }
  0x40   : > { %878 = vset.pattern.permute.xlu2 %v1062_v5 }
  0x41   : > { %877 = vset.pattern.permute.xlu1 %v1063_v6  ;;  %876 = vset.pattern.permute.xlu0 %v1063_v6 }
  0x42   : > { %258 = vperm.xlu2 %878, %v1205_v3   ;;  %248 = vperm.xlu1 %877, %v1210_v4  }
  0x43   : > { %244 = vperm.xlu0 %876, %v1205_v3  }
  0x4a   : > { %880 = vset.pattern.permute.xlu2 %v1064_v7  ;;  %879 = vset.pattern.permute.xlu1 %v1062_v5 }
  0x4b   : > { %881 = vset.pattern.permute.xlu0 %v1064_v7  ;;  %270 = vperm.xlu2 %880, %v1205_v3  }
  0x4c   : > { %262 = vperm.xlu1 %879, %v1210_v4   ;;  %274 = vperm.xlu0 %881, %v1210_v4  }
  0x53   : > { %883 = vset.pattern.permute.xlu2 %v1065_v8 }
  0x54   : > { %882 = vset.pattern.permute.xlu1 %v1065_v8  ;;  %886 = vset.pattern.permute.xlu0 %v1066_v9 }
  0x55   : > { %292 = vperm.xlu2 %883, %v1210_v4   ;;  %288 = vperm.xlu1 %882, %v1205_v3  }
  0x56   : > { %324 = vperm.xlu0 %886, %v1205_v3  }
  0x5d   : > { %885 = vset.pattern.permute.xlu2 %v1067_v10  ;;  %884 = vset.pattern.permute.xlu1 %v1067_v10 }
  0x5e   : > { %891 = vset.pattern.permute.xlu0 %v1068_v11  ;;  %310 = vperm.xlu2 %885, %v1210_v4  }
  0x5f   : > { %306 = vperm.xlu1 %884, %v1205_v3   ;;  %364 = vperm.xlu0 %891, %v1210_v4  }
  0x66   : > { %888 = vset.pattern.permute.xlu2 %v1069_v12 }
  0x67   : > { %887 = vset.pattern.permute.xlu1 %v1066_v9  ;;  %896 = vset.pattern.permute.xlu0 %v1070_v13 }
  0x68   : > { %342 = vperm.xlu2 %888, %v1205_v3   ;;  %328 = vperm.xlu1 %887, %v1210_v4  }
  0x69   : > { %414 = vperm.xlu0 %896, %v1205_v3  }
  0x70   : > { %890 = vset.pattern.permute.xlu2 %v1068_v11  ;;  %889 = vset.pattern.permute.xlu1 %v1069_v12 }
  0x71   : > { %360 = vperm.xlu2 %890, %v1205_v3   ;;  %346 = vperm.xlu1 %889, %v1210_v4  }
  0x72   : > { %901 = vset.pattern.permute.xlu0 %v1071_v14 }
  0x73   : > { %454 = vperm.xlu0 %901, %v1210_v4  }
  0x79   : > { %893 = vset.pattern.permute.xlu2 %v1072_v15  ;;  %892 = vset.pattern.permute.xlu1 %v1072_v15 }
  0x7a   : > { %382 = vperm.xlu2 %893, %v1210_v4   ;;  %378 = vperm.xlu1 %892, %v1205_v3  }
  0x7b   : > { %906 = vset.pattern.permute.xlu0 %v1073_v16 }
  0x7c   : > { %498 = vperm.xlu0 %906, %v1205_v3  }
  0x82   : > { %895 = vset.pattern.permute.xlu2 %v1074_v17  ;;  %894 = vset.pattern.permute.xlu1 %v1074_v17 }
  0x83   : > { %400 = vperm.xlu2 %895, %v1210_v4   ;;  %396 = vperm.xlu1 %894, %v1205_v3  }
  0x84   : > { %911 = vset.pattern.permute.xlu0 %v1075_v18 }
  0x85   : > { %538 = vperm.xlu0 %911, %v1210_v4  }
  0x8a   : > { %v219_v20 = vpop.permute.xlu2 %218 }
  0x8b   : > { %898 = vset.pattern.permute.xlu2 %v1076_v19  ;;  %897 = vset.pattern.permute.xlu1 %v1070_v13  ;;  %v231_v36 = vmul.f32 %v229_v30, %v219_v20  ;;  %v232_v37 = vmul.f32 %v230_v31, %v219_v20 }
  0x8c   : > { %436 = vperm.xlu2 %898, %v1205_v3   ;;  %418 = vperm.xlu1 %897, %v1210_v4  }
  0x8d   : > { %916 = vset.pattern.permute.xlu0 %v1077_v21 }
  0x8e   : > { %592 = vperm.xlu0 %916, %v1210_v4  }
  0x92   : > { %v223_v22 = vpop.permute.xlu2 %222 }
  0x93   : > { %v233_v54 = vmul.f32 %v229_v30, %v223_v22  ;;  %v234_v55 = vmul.f32 %v230_v31, %v223_v22  ;;  %v1082_v31 = vmov 20  }
  0x94   : > { %900 = vset.pattern.permute.xlu2 %v1071_v14  ;;  %899 = vset.pattern.permute.xlu1 %v1076_v19 }
  0x95   : > { %450 = vperm.xlu2 %900, %v1205_v3   ;;  %440 = vperm.xlu1 %899, %v1210_v4  }
  0x96   : > { %921 = vset.pattern.permute.xlu0 %v1081_v29 }
  0x97   : > { %628 = vperm.xlu0 %921, %v1205_v3  }
  0x9c   : > { %v1248_v24 = vpop.permute.xlu2 %258 }
  0x9d   : > { %903 = vset.pattern.permute.xlu2 %v1078_v27  ;;  %902 = vset.pattern.permute.xlu1 %v1078_v27 }
  0x9e   : > { %466 = vperm.xlu2 %903, %v1210_v4   ;;  %462 = vperm.xlu1 %902, %v1205_v3  }
  0xa3   : > { %v207_v34 = vpop.permute.xlu1 %206  ;;  %v187_v35 = vpop.permute.xlu0 %186 }
  0xa4   : > { %v201_v38 = vmul.f32 %v199_v32, %v187_v35  ;;  %v202_v39 = vmul.f32 %v200_v33, %v187_v35 }
  0xa5   : > { %v271_v41 = vpop.permute.xlu2 %270 }
  0xa6   : > { %905 = vset.pattern.permute.xlu2 %v1079_v40  ;;  %v213_v42 = vadd.f32 %v207_v34, %v201_v38  ;;  %v214_v43 = vadd.f32 %v207_v34, %v202_v39  ;;  %904 = vset.pattern.permute.xlu1 %v1079_v40 }
  0xa7   : > { %484 = vperm.xlu2 %905, %v1210_v4   ;;  %480 = vperm.xlu1 %904, %v1205_v3  }
  0xa8   : > { %v235_v44 = vadd.f32 %v231_v36, %v213_v42  ;;  %v236_v45 = vadd.f32 %v232_v37, %v214_v43 }
  0xaa   : > { %v1254_v46 = vmax.f32 %v235_v44, 0.0  ;;  %v1256_v47 = vmax.f32 %v236_v45, 0.0 }
  0xab   : > { %v211_v48 = vpop.permute.xlu1 %210  ;;  %v192_v49 = vpop.permute.xlu0 %191 }
  0xac   : > { %v277_v50 = vperm.slane %v1254_v46, 1  ;;  %v278_v51 = vperm.slane %v1256_v47, 1  ;;  %v203_v52 = vmul.f32 %v199_v32, %v192_v49  ;;  %v204_v53 = vmul.f32 %v200_v33, %v192_v49 }
  0xad   : > { %v295_v56 = vperm.slane %v1254_v46, 2  ;;  %v296_v57 = vperm.slane %v1256_v47, 2  ;;  %v251_v6 = vperm.slane %v1254_v46, 0  ;;  %v252_v7 = vperm.slane %v1256_v47, 0 }
  0xae   : > { %v279_v58 = vmul.f32 %v277_v50, %v271_v41  ;;  %v280_v59 = vmul.f32 %v278_v51, %v271_v41  ;;  %v215_v60 = vadd.f32 %v211_v48, %v203_v52  ;;  %v216_v61 = vadd.f32 %v211_v48, %v204_v53 }
  0xaf   : > { %908 = vset.pattern.permute.xlu2 %v1080_v62  ;;  %v293_v63 = vpop.permute.xlu2 %292  ;;  %907 = vset.pattern.permute.xlu1 %v1073_v16  ;;  %v313_v16 = vperm.slane %v1254_v46, 3  ;;  %v314_v17 = vperm.slane %v1256_v47, 3  ;;  %v349_v32 = vperm.slane %v1254_v46, 5  ;;  %v350_v33 = vperm.slane %v1256_v47, 5 }
  0xb0   : > { %516 = vperm.xlu2 %908, %v1205_v3   ;;  %v299_v0 = vmul.f32 %v295_v56, %v293_v63  ;;  %v300_v1 = vmul.f32 %v296_v57, %v293_v63  ;;  %v1268_v2 = vadd.f32 %v233_v54, %v215_v60  ;;  %v1270_v5 = vadd.f32 %v234_v55, %v216_v61 }
  0xb1   : > { %502 = vperm.xlu1 %907, %v1210_v4   ;;  %v1083_v48 = vmov 21   ;;  %v331_v53 = vperm.slane %v1254_v46, 4  ;;  %v1084_v55 = vmov 26   ;;  %v1085_v60 = vmov 23  }
  0xb2   : > { %923 = vset.pattern.permute.xlu0 %v1084_v55  ;;  %v385_v61 = vperm.slane %v1254_v46, 7 }
  0xb4   : > { %v249_v8 = vpop.permute.xlu1 %248 }
  0xb5   : > { %v245_v9 = vpop.permute.xlu0 %244  ;;  %v255_v10 = vmul.f32 %v251_v6, %v249_v8  ;;  %v256_v11 = vmul.f32 %v252_v7, %v249_v8 }
  0xb6   : > { %v253_v12 = vmul.f32 %v251_v6, %v245_v9  ;;  %v254_v13 = vmul.f32 %v252_v7, %v245_v9  ;;  %v367_v9 = vperm.slane %v1254_v46, 6 }
  0xb8   : > { %v265_v14 = vadd.f32 %v1248_v24, %v253_v12  ;;  %v266_v15 = vadd.f32 %v1248_v24, %v254_v13  ;;  %910 = vset.pattern.permute.xlu2 %v1075_v18  ;;  %v311_v19 = vpop.permute.xlu2 %310  ;;  %v241_v13 = vmax.f32 %v1268_v2, 0.0 }
  0xb9   : > { %909 = vset.pattern.permute.xlu1 %v1080_v62  ;;  %534 = vperm.xlu2 %910, %v1205_v3   ;;  %v317_v20 = vmul.f32 %v313_v16, %v311_v19  ;;  %v318_v22 = vmul.f32 %v314_v17, %v311_v19  ;;  %v386_v62 = vperm.slane %v1256_v47, 7 }
  0xba   : > { %520 = vperm.xlu1 %909, %v1210_v4   ;;  %v283_v23 = vadd.f32 %v279_v58, %v265_v14  ;;  %v284_v25 = vadd.f32 %v280_v59, %v266_v15 }
  0xbe   : > { %v263_v26 = vpop.permute.xlu1 %262  ;;  %v275_v24 = vpop.permute.xlu0 %274 }
  0xbf   : > { %v267_v27 = vadd.f32 %v263_v26, %v255_v10  ;;  %v268_v28 = vadd.f32 %v263_v26, %v256_v11  ;;  %v281_v18 = vmul.f32 %v277_v50, %v275_v24  ;;  %v282_v30 = vmul.f32 %v278_v51, %v275_v24 }
  0xc0   : > { %v368_v10 = vperm.slane %v1256_v47, 6 }
  0xc1   : > { %913 = vset.pattern.permute.xlu2 %v1082_v31  ;;  %v285_v34 = vadd.f32 %v281_v18, %v267_v27  ;;  %v286_v35 = vadd.f32 %v282_v30, %v268_v28  ;;  %v656_v30 = vld [vmem:[#allocation5] sm:$0x1] }
  0xc2   : > { %912 = vset.pattern.permute.xlu1 %v1082_v31  ;;  %552 = vperm.xlu2 %913, %v1205_v3   ;;  %v343_v36 = vpop.permute.xlu2 %342  ;;  %v242_v31 = vmax.f32 %v1270_v5, 0.0 }
  0xc3   : > { %v351_v37 = vmul.f32 %v349_v32, %v343_v36  ;;  %v352_v38 = vmul.f32 %v350_v33, %v343_v36  ;;  %556 = vperm.xlu1 %912, %v1210_v4   ;;  %v303_v39 = vadd.f32 %v299_v0, %v285_v34  ;;  %v304_v40 = vadd.f32 %v300_v1, %v286_v35 }
  0xc5   : > { %v321_v41 = vadd.f32 %v317_v20, %v303_v39  ;;  %v322_v42 = vadd.f32 %v318_v22, %v304_v40 }
  0xc7   : > { %v289_v43 = vpop.permute.xlu1 %288 }
  0xc8   : > { %v297_v44 = vmul.f32 %v295_v56, %v289_v43  ;;  %v298_v45 = vmul.f32 %v296_v57, %v289_v43  ;;  %v325_v52 = vpop.permute.xlu0 %324  ;;  %v332_v56 = vperm.slane %v1256_v47, 4 }
  0xc9   : > { %v333_v59 = vmul.f32 %v331_v53, %v325_v52 }
  0xca   : > { %915 = vset.pattern.permute.xlu2 %v1083_v48  ;;  %v301_v49 = vadd.f32 %v297_v44, %v283_v23  ;;  %v302_v50 = vadd.f32 %v298_v45, %v284_v25  ;;  %v334_v63 = vmul.f32 %v332_v56, %v325_v52  ;;  %v403_v25 = vperm.slane %v241_v13, 0 }
  0xcb   : > { %914 = vset.pattern.permute.xlu1 %v1083_v48  ;;  %570 = vperm.xlu2 %915, %v1205_v3   ;;  %v361_v51 = vpop.permute.xlu2 %360 }
  0xcc   : > { %574 = vperm.xlu1 %914, %v1210_v4   ;;  %v369_v14 = vmul.f32 %v367_v9, %v361_v51  ;;  %v370_v15 = vmul.f32 %v368_v10, %v361_v51  ;;  %v422_v51 = vperm.slane %v242_v31, 1 }
  0xd1   : > { %v307_v54 = vpop.permute.xlu1 %306  ;;  %v365_v2 = vpop.permute.xlu0 %364 }
  0xd2   : > { %v315_v58 = vmul.f32 %v313_v16, %v307_v54  ;;  %v316_v57 = vmul.f32 %v314_v17, %v307_v54  ;;  %v371_v35 = vmul.f32 %v367_v9, %v365_v2  ;;  %v372_v36 = vmul.f32 %v368_v10, %v365_v2 }
  0xd3   : > { %918 = vset.pattern.permute.xlu2 %v1085_v60 }
  0xd4   : > { %v319_v0 = vadd.f32 %v315_v58, %v301_v49  ;;  %v320_v1 = vadd.f32 %v316_v57, %v302_v50  ;;  %917 = vset.pattern.permute.xlu1 %v1077_v21  ;;  %610 = vperm.xlu2 %918, %v1210_v4   ;;  %v383_v6 = vpop.permute.xlu2 %382  ;;  %v421_v50 = vperm.slane %v241_v13, 1 }
  0xd5   : > { %v389_v7 = vmul.f32 %v385_v61, %v383_v6  ;;  %v390_v8 = vmul.f32 %v386_v62, %v383_v6  ;;  %588 = vperm.xlu1 %917, %v1205_v3  }
  0xd6   : > { %v337_v11 = vadd.f32 %v333_v59, %v319_v0  ;;  %v338_v12 = vadd.f32 %v334_v63, %v320_v1 }
  0xd8   : > { %v355_v16 = vadd.f32 %v351_v37, %v337_v11  ;;  %v356_v17 = vadd.f32 %v352_v38, %v338_v12  ;;  %v404_v38 = vperm.slane %v242_v31, 0 }
  0xda   : > { %v373_v21 = vadd.f32 %v369_v14, %v355_v16  ;;  %v374_v19 = vadd.f32 %v370_v15, %v356_v17  ;;  %v329_v20 = vpop.permute.xlu1 %328 }
  0xdb   : > { %v335_v22 = vmul.f32 %v331_v53, %v329_v20  ;;  %v336_v23 = vmul.f32 %v332_v56, %v329_v20  ;;  %v415_v48 = vpop.permute.xlu0 %414 }
  0xdc   : > { %920 = vset.pattern.permute.xlu2 %v1081_v29  ;;  %v423_v54 = vmul.f32 %v421_v50, %v415_v48 }
  0xdd   : > { %919 = vset.pattern.permute.xlu1 %v1085_v60  ;;  %v401_v26 = vpop.permute.xlu2 %400  ;;  %632 = vperm.xlu2 %920, %v1210_v4   ;;  %v339_v27 = vadd.f32 %v335_v22, %v321_v41  ;;  %v340_v28 = vadd.f32 %v336_v23, %v322_v42 }
  0xde   : > { %v407_v24 = vmul.f32 %v403_v25, %v401_v26  ;;  %606 = vperm.xlu1 %919, %v1205_v3   ;;  %v408_v40 = vmul.f32 %v404_v38, %v401_v26 }
  0xe3   : > { %v347_v18 = vpop.permute.xlu1 %346 }
  0xe4   : > { %v353_v34 = vmul.f32 %v349_v32, %v347_v18  ;;  %v354_v29 = vmul.f32 %v350_v33, %v347_v18 }
  0xe5   : > { %v455_v12 = vpop.permute.xlu0 %454 }
  0xe6   : > { %922 = vset.pattern.permute.xlu1 %v1084_v55  ;;  %v357_v4 = vadd.f32 %v353_v34, %v339_v27  ;;  %v358_v37 = vadd.f32 %v354_v29, %v340_v28  ;;  %v437_v45 = vpop.permute.xlu2 %436  ;;  %v424_v55 = vmul.f32 %v422_v51, %v415_v48 }
  0xe7   : > { %659 = vperm.xlu1 %922, %v656_v30  }
  0xe8   : > { %v375_v39 = vadd.f32 %v371_v35, %v357_v4  ;;  %v376_v3 = vadd.f32 %v372_v36, %v358_v37 }
  0xea   : > { %v393_v41 = vadd.f32 %v389_v7, %v375_v39  ;;  %v394_v42 = vadd.f32 %v390_v8, %v376_v3 }
  0xec   : > { %v379_v43 = vpop.permute.xlu1 %378  ;;  %v411_v5 = vadd.f32 %v407_v24, %v393_v41  ;;  %v412_v44 = vadd.f32 %v408_v40, %v394_v42 }
  0xed   : > { %v387_v46 = vmul.f32 %v385_v61, %v379_v43  ;;  %v388_v32 = vmul.f32 %v386_v62, %v379_v43 }
  0xef   : > { %v391_v47 = vadd.f32 %v387_v46, %v373_v21  ;;  %v392_v33 = vadd.f32 %v388_v32, %v374_v19  ;;  %v451_v57 = vpop.permute.xlu2 %450  ;;  %v499_v19 = vpop.permute.xlu0 %498 }
  0xf5   : > { %v397_v49 = vpop.permute.xlu1 %396 }
  0xf6   : > { %v405_v52 = vmul.f32 %v403_v25, %v397_v49  ;;  %v406_v53 = vmul.f32 %v404_v38, %v397_v49 }
  0xf8   : > { %v409_v56 = vadd.f32 %v405_v52, %v391_v47  ;;  %v410_v58 = vadd.f32 %v406_v53, %v392_v33  ;;  %v467_v6 = vpop.permute.xlu2 %466 }
  0xfa   : > { %v427_v59 = vadd.f32 %v423_v54, %v409_v56  ;;  %v428_v60 = vadd.f32 %v424_v55, %v410_v58 }
  0xfc   : > { %v1324_v14 = vmax.f32 %v427_v59, 0.0  ;;  %v1326_v15 = vmax.f32 %v428_v60, 0.0 }
  0xfe   : > { %v419_v63 = vpop.permute.xlu1 %418  ;;  %v443_v17 = vperm.slane %v1324_v14, 0  ;;  %v444_v21 = vperm.slane %v1326_v15, 0  ;;  %v469_v23 = vperm.slane %v1324_v14, 1  ;;  %v470_v25 = vperm.slane %v1326_v15, 1 }
  0xff   : > { %v425_v0 = vmul.f32 %v421_v50, %v419_v63  ;;  %v426_v61 = vmul.f32 %v422_v51, %v419_v63  ;;  %v505_v30 = vperm.slane %v1324_v14, 3  ;;  %v506_v31 = vperm.slane %v1326_v15, 3 }
 0x100   : > { %v445_v2 = vmul.f32 %v443_v17, %v437_v45  ;;  %v446_v18 = vmul.f32 %v444_v21, %v437_v45  ;;  %v473_v34 = vmul.f32 %v469_v23, %v467_v6  ;;  %v474_v29 = vmul.f32 %v470_v25, %v467_v6 }
 0x101   : > { %v1316_v62 = vadd.f32 %v425_v0, %v411_v5  ;;  %v1318_v1 = vadd.f32 %v426_v61, %v412_v44  ;;  %v485_v8 = vpop.permute.xlu2 %484  ;;  %v487_v35 = vperm.slane %v1324_v14, 2  ;;  %v488_v36 = vperm.slane %v1326_v15, 2  ;;  %v539_v44 = vpop.permute.xlu0 %538 }
 0x102   : > { %v523_v3 = vperm.slane %v1324_v14, 4  ;;  %v524_v40 = vperm.slane %v1326_v15, 4  ;;  %v457_v41 = vadd.f32 %v451_v57, %v445_v2  ;;  %v458_v42 = vadd.f32 %v451_v57, %v446_v18 }
 0x103   : > { %v491_v46 = vmul.f32 %v487_v35, %v485_v8  ;;  %v492_v32 = vmul.f32 %v488_v36, %v485_v8  ;;  %v541_v58 = vperm.slane %v1324_v14, 5  ;;  %v542_v57 = vperm.slane %v1326_v15, 5 }
 0x104   : > { %v507_v63 = vmul.f32 %v505_v30, %v499_v19  ;;  %v508_v0 = vmul.f32 %v506_v31, %v499_v19  ;;  %v433_v61 = vmax.f32 %v1316_v62, 0.0  ;;  %v434_v6 = vmax.f32 %v1318_v1, 0.0 }
 0x105   : > { %v560_v8 = vperm.slane %v1326_v15, 6  ;;  %v577_v1 = vperm.slane %v1324_v14, 7 }
 0x107   : > { %v441_v7 = vpop.permute.xlu1 %440 }
 0x108   : > { %v447_v20 = vmul.f32 %v443_v17, %v441_v7  ;;  %v448_v22 = vmul.f32 %v444_v21, %v441_v7  ;;  %v559_v7 = vperm.slane %v1324_v14, 6  ;;  %v545_v17 = vmul.f32 %v541_v58, %v539_v44 }
 0x109   : > { %v546_v21 = vmul.f32 %v542_v57, %v539_v44  ;;  %v614_v14 = vperm.slane %v434_v6, 1 }
 0x10a   : > { %v1320_v10 = vpop.permute.xlu2 %516  ;;  %v459_v28 = vadd.f32 %v455_v12, %v447_v20  ;;  %v460_v24 = vadd.f32 %v455_v12, %v448_v22 }
 0x10b   : > { %v525_v19 = vmul.f32 %v523_v3, %v1320_v10  ;;  %v526_v62 = vmul.f32 %v524_v40, %v1320_v10 }
 0x10c   : > { %v477_v38 = vadd.f32 %v473_v34, %v459_v28  ;;  %v478_v39 = vadd.f32 %v474_v29, %v460_v24  ;;  %v578_v28 = vperm.slane %v1326_v15, 7 }
 0x10e   : > { %v495_v49 = vadd.f32 %v491_v46, %v477_v38  ;;  %v496_v50 = vadd.f32 %v492_v32, %v478_v39 }
 0x110   : > { %v463_v9 = vpop.permute.xlu1 %462 }
 0x111   : > { %v471_v4 = vmul.f32 %v469_v23, %v463_v9  ;;  %v472_v37 = vmul.f32 %v470_v25, %v463_v9  ;;  %v595_v23 = vperm.slane %v433_v61, 0  ;;  %v596_v25 = vperm.slane %v434_v6, 0 }
 0x113   : > { %v1322_v13 = vpop.permute.xlu2 %534  ;;  %v475_v33 = vadd.f32 %v471_v4, %v457_v41  ;;  %v476_v48 = vadd.f32 %v472_v37, %v458_v42 }
 0x114   : > { %v543_v38 = vmul.f32 %v541_v58, %v1322_v13  ;;  %v544_v10 = vmul.f32 %v542_v57, %v1322_v13 }
 0x119   : > { %v481_v11 = vpop.permute.xlu1 %480 }
 0x11a   : > { %v489_v43 = vmul.f32 %v487_v35, %v481_v11  ;;  %v490_v5 = vmul.f32 %v488_v36, %v481_v11 }
 0x11c   : > { %v1332_v26 = vpop.permute.xlu2 %552  ;;  %v493_v54 = vadd.f32 %v489_v43, %v475_v33  ;;  %v494_v55 = vadd.f32 %v490_v5, %v476_v48 }
 0x11d   : > { %v561_v32 = vmul.f32 %v559_v7, %v1332_v26 }
 0x11e   : > { %v511_v12 = vadd.f32 %v507_v63, %v493_v54 }
 0x120   : > { %v529_v18 = vadd.f32 %v525_v19, %v511_v12 }
 0x122   : > { %v547_v41 = vadd.f32 %v543_v38, %v529_v18 }
 0x123   : > { %v503_v16 = vpop.permute.xlu1 %502 }
 0x124   : > { %v509_v45 = vmul.f32 %v505_v30, %v503_v16  ;;  %v510_v47 = vmul.f32 %v506_v31, %v503_v16  ;;  %v512_v16 = vadd.f32 %v508_v0, %v494_v55  ;;  %v565_v13 = vadd.f32 %v561_v32, %v547_v41 }
 0x125   : > { %v571_v56 = vpop.permute.xlu2 %570 }
 0x126   : > { %v513_v59 = vadd.f32 %v509_v45, %v495_v49  ;;  %v514_v60 = vadd.f32 %v510_v47, %v496_v50  ;;  %v530_v30 = vadd.f32 %v526_v62, %v512_v16  ;;  %v562_v45 = vmul.f32 %v560_v8, %v1332_v26 }
 0x127   : > { %v579_v47 = vmul.f32 %v577_v1, %v571_v56  ;;  %v580_v33 = vmul.f32 %v578_v28, %v571_v56 }
 0x128   : > { %v548_v42 = vadd.f32 %v544_v10, %v530_v30 }
 0x12a   : > { %v566_v50 = vadd.f32 %v562_v45, %v548_v42 }
 0x12c   : > { %v521_v27 = vpop.permute.xlu1 %520 }
 0x12d   : > { %v527_v51 = vmul.f32 %v523_v3, %v521_v27  ;;  %v528_v52 = vmul.f32 %v524_v40, %v521_v27  ;;  %v593_v27 = vpop.permute.xlu0 %592  ;;  %v613_v3 = vperm.slane %v433_v61, 1 }
 0x12e   : > { %v599_v4 = vmul.f32 %v595_v23, %v593_v27  ;;  %v600_v37 = vmul.f32 %v596_v25, %v593_v27  ;;  %v611_v39 = vpop.permute.xlu2 %610 }
 0x12f   : > { %v531_v9 = vadd.f32 %v527_v51, %v513_v59  ;;  %v532_v11 = vadd.f32 %v528_v52, %v514_v60  ;;  %v617_v43 = vmul.f32 %v613_v3, %v611_v39  ;;  %v618_v5 = vmul.f32 %v614_v14, %v611_v39 }
 0x130   : > { %v583_v52 = vadd.f32 %v579_v47, %v565_v13 }
 0x131   : > { %v549_v24 = vadd.f32 %v545_v17, %v531_v9  ;;  %v550_v2 = vadd.f32 %v546_v21, %v532_v11 }
 0x135   : > { %v557_v53 = vpop.permute.xlu1 %556  ;;  %v629_v9 = vpop.permute.xlu0 %628 }
 0x136   : > { %v563_v20 = vmul.f32 %v559_v7, %v557_v53  ;;  %v564_v22 = vmul.f32 %v560_v8, %v557_v53  ;;  %v584_v53 = vadd.f32 %v580_v33, %v566_v50 }
 0x137   : > { %v633_v0 = vpop.permute.xlu2 %632 }
 0x138   : > { %v567_v34 = vadd.f32 %v563_v20, %v549_v24  ;;  %v568_v29 = vadd.f32 %v564_v22, %v550_v2 }
 0x13e   : > { %v575_v31 = vpop.permute.xlu1 %574 }
 0x13f   : > { %v581_v35 = vmul.f32 %v577_v1, %v575_v31  ;;  %v582_v36 = vmul.f32 %v578_v28, %v575_v31 }
 0x141   : > { %v585_v40 = vadd.f32 %v581_v35, %v567_v34  ;;  %v586_v15 = vadd.f32 %v582_v36, %v568_v29  ;;  %v670_v35 = vlaneseq }
 0x143   : > { %v603_v44 = vadd.f32 %v599_v4, %v585_v40  ;;  %v604_v46 = vadd.f32 %v600_v37, %v586_v15  ;;  %vm672_vm2 = vcmp.lt.s32.totalorder %v670_v35, 256 }
 0x145   : > { %v621_v48 = vadd.f32 %v617_v43, %v603_v44  ;;  %v622_v49 = vadd.f32 %v618_v5, %v604_v46 }
 0x147   : > { %v589_v51 = vpop.permute.xlu1 %588  ;;  %v625_v59 = vmax.f32 %v621_v48, 0.0  ;;  %v626_v60 = vmax.f32 %v622_v49, 0.0 }
 0x148   : > { %v597_v54 = vmul.f32 %v595_v23, %v589_v51  ;;  %v598_v55 = vmul.f32 %v596_v25, %v589_v51 }
 0x149   : > { %v637_v56 = vmul.f32 %v633_v0, %v625_v59  ;;  %v638_v8 = vmul.f32 %v633_v0, %v626_v60 }
 0x14a   : > { %v601_v58 = vadd.f32 %v597_v54, %v583_v52  ;;  %v602_v57 = vadd.f32 %v598_v55, %v584_v53 }
 0x14b   : > { %v640_v21 = vsel %vm639_vm0, %v637_v56, 0.0  ;;  %v648_v20 = vsel %vm639_vm0, %v638_v8, 0.0 }
 0x150   : > { %v607_v63 = vpop.permute.xlu1 %606 }
 0x151   : > { %v615_v61 = vmul.f32 %v613_v3, %v607_v63  ;;  %v616_v6 = vmul.f32 %v614_v14, %v607_v63 }
 0x153   : > { %v619_v26 = vadd.f32 %v615_v61, %v601_v58  ;;  %v620_v7 = vadd.f32 %v616_v6, %v602_v57 }
 0x155   : > { %v623_v11 = vmax.f32 %v619_v26, 0.0  ;;  %v624_v12 = vmax.f32 %v620_v7, 0.0 }
 0x157   : > { %v635_v16 = vmul.f32 %v629_v9, %v623_v11  ;;  %v636_v17 = vmul.f32 %v629_v9, %v624_v12 }
 0x159   : > { %v641_v22 = vadd.f32 %v640_v21, %v635_v16  ;;  %v649_v23 = vadd.f32 %v648_v20, %v636_v17  ;;  %v660_v31 = vpop.permute.xlu1 %659 }
 0x15b   : > { %v642_v25 = vrot.slane %v641_v22, 4  ;;  %v650_v19 = vrot.slane %v649_v23, 4 }
 0x15d   : > { %v643_v62 = vadd.f32 %v642_v25, %v641_v22  ;;  %v651_v27 = vadd.f32 %v650_v19, %v649_v23 }
 0x15f   : > { %v644_v1 = vrot.slane %v643_v62, 2  ;;  %v652_v28 = vrot.slane %v651_v27, 2 }
 0x161   : > { %v645_v24 = vadd.f32 %v644_v1, %v643_v62  ;;  %v653_v2 = vadd.f32 %v652_v28, %v651_v27 }
 0x163   : > { %v646_v18 = vrot.slane %v645_v24, 1  ;;  %v654_v30 = vrot.slane %v653_v2, 1 }
 0x165   : > { %v647_v34 = vadd.f32 %v646_v18, %v645_v24  ;;  %v655_v29 = vadd.f32 %v654_v30, %v653_v2 }
 0x167   : > { %v663_v36 = vadd.f32 %v660_v31, %v655_v29  ;;  %v662_v4 = vadd.f32 %v660_v31, %v647_v34 }
 0x169   : > { %v666_v37 = vrot.slane %v663_v36, 7 }
 0x16b   : > { %v668_v38 = vsel %vm667_vm1, %v662_v4, %v666_v37 }
 0x16c   : > { %674 = vst.msk [vmem:[%s178_s14] sm:$0x3] %vm672_vm2, %v668_v38 }
 0x16d   : > { %1011 = shalt.err (!%p1008_p8)
}
 0x16e   : > { %793 = dma.vmem_to_hbm [thread:$0]  (%p1160_p12), %s689_s15, 32, %s691_s18, %s676_s16  }
 0x16f PF: > { %p810_p9 = scmp.ge.s32.totalorder %s1054_s12, 2  ;;  %s702_s29 = sand.u32 1, %s1042_s9  }
 0x170   : > { %s703_s4 = scalar_lea.sflag [#allocation4], %s702_s29 }
 0x171   : > { %p804_p10 = pnand %p810_p9, %p1165_p2 }
 0x173   : > { %p805_p13 = pneg %p804_p10 }
 0x175   : > { %1037 = dma.done.wait (%p805_p13), %s703_s4, 32  }
 0x176   : > { %1039 = vsyncadd (%p805_p13), %s703_s4, 4294967264  ;;  %p16_p0 = scmp.ge.s32.totalorder %s1140_s23, 6   ;;  %s1395_s9 = smov %s1046_s10 }
 0x177   : > { %s1396_s10 = smov %s1050_s11  ;;  %s1397_s11 = smov %s1152_s26 }
 0x178   : > { %s1398_s12 = smov %s1140_s23  ;;  %18 = sbr.rel (!%p16_p0) target bundleno = 6 (0x6), region = 77 }
 0x17d   :  { %709 = vsyncpa [#allocation3], 1 }
 0x17e   :  { %711 = vsyncpa [#allocation3 + $0x1], 1 }
 0x17f   :  { %712 = vsyncpa [#allocation6], 1 }
 0x180   :  { %713 = vsyncpa [#allocation4], 1 }
 0x181   :  { %715 = vsyncpa [#allocation4 + $0x1], 1 }

</bundles_post_ra>
